<compile_context>
chip_gen: v7x
topology: tpu7x:2x2x1
jax: 0.10.0
libtpu: 0.0.40
codegen_flags: <defaults>
</compile_context>

<pallas_src>
import functools

import numpy as np
import jax
import jax.numpy as jnp
from jax import lax
from jax.experimental import pallas as pl
from jax.experimental.pallas import tpu as pltpu


def _packed_key(v, tie_bits, hi_mask):
    """Order-preserving i32 key of f32 `v`; low index bits <- `tie_bits`.

    Integer max over the keys == argmax over v with ties broken toward the
    largest `tie_bits` (we pass n-1-row, i.e. smallest row index). Keys are
    unique because the index bits are unique.
    """
    i = pltpu.bitcast(v, jnp.int32)
    srt = jnp.where(i < 0, jnp.bitwise_xor(i, jnp.int32(0x7FFFFFFF)), i)
    return jnp.bitwise_or(jnp.bitwise_and(srt, hi_mask), tie_bits)


def _mildropout_kernel(x_ref, o_ref, *, topk, kk, topk_pad, idx_bits, mm_dtype):
    n, _ = x_ref.shape

    SENT = jnp.int32(np.iinfo(np.int32).min)      # below every real packed key
    idx_mask = jnp.int32((1 << idx_bits) - 1)
    hi_mask = jnp.int32(-(1 << idx_bits))         # == ~idx_mask (two's complement)

    row_ids = lax.broadcasted_iota(jnp.int32, (n, 1), 0)              # (n,1)
    rev_row = (n - 1) - row_ids                                       # (n,1)
    sub_ids_kn = lax.broadcasted_iota(jnp.int32, (topk_pad, n), 0)    # (topk_pad,n)
    col_ids_kn = lax.broadcasted_iota(jnp.int32, (topk_pad, n), 1)    # (topk_pad,n)
    lane_ids_k = lax.broadcasted_iota(jnp.int32, (1, topk_pad), 1)    # (1,topk_pad)

    # ---- phase 0: row stats (f32 promote only feeds these reductions) ------
    xf = x_ref[...].astype(jnp.float32)            # short-lived; not reused
    row_sum = jnp.sum(xf, axis=1, keepdims=True)                      # (n,1)
    row_sumsq = jnp.sum(xf * xf, axis=1, keepdims=True)               # (n,1)
    del xf
    # F.normalize(p=2, eps=1e-12): 1/max(||x||,eps) == rsqrt(max(||x||^2,eps^2))
    inv_norm = lax.rsqrt(jnp.maximum(row_sumsq, jnp.float32(1e-24)))  # (n,1)
    # MXU operand: the input block itself (bf16 stays bf16; f32 stays f32
    # unless the caller opted into bf16 similarity matmuls via mxu_dtype).
    x_mm = x_ref[...].astype(mm_dtype)                                # (n,f)

    # ---- phase 1: top-k rows (fused packed argmax, one reduce per step) ----
    imp_key = _packed_key(row_sum, rev_row, hi_mask)                  # (n,1)
    is_top = jnp.zeros((n, 1), jnp.bool_)
    sel = jnp.zeros((topk_pad, n), mm_dtype)          # one-hot row selectors
    one = jnp.ones((), mm_dtype)
    for t in range(topk):                              # tiny static unroll
        cur = jnp.where(is_top, SENT, imp_key)
        m = jnp.max(cur, axis=0, keepdims=True)                       # (1,1)
        ridx = (n - 1) - jnp.bitwise_and(m, idx_mask)                 # winner row
        is_top = jnp.logical_or(is_top, row_ids == ridx)
        sel = jnp.where(
            jnp.logical_and(sub_ids_kn == t, col_ids_kn == ridx), one, sel)

    # ---- phase 2: similarities of the topk rows vs all rows (no xn) --------
    # Gather the topk RAW rows (one-hot matmul is an exact gather), normalize
    # only that tiny block, and fold the per-row 1/||x_j|| in after the matmul.
    top_raw = lax.dot_general(sel, x_mm, (((1,), (0,)), ((), ())),
                              preferred_element_type=jnp.float32)     # (topk_pad,f)
    top_sumsq = jnp.sum(top_raw * top_raw, axis=1, keepdims=True)     # (topk_pad,1)
    top_norm = (top_raw * lax.rsqrt(jnp.maximum(top_sumsq, jnp.float32(1e-24)))
                ).astype(mm_dtype)                                    # (topk_pad,f)
    # sim[j,t] = <x_j, top_norm_t> * inv_norm_j: contract both on the feature
    # axis so Mosaic only transposes the small (topk_pad,f) operand, never x.
    sim = lax.dot_general(x_mm, top_norm, (((1,), (1,)), ((), ())),
                          preferred_element_type=jnp.float32)         # (n,topk_pad)
    sim = sim * inv_norm

    # ---- phase 3: per-top-row top-kk columns, vectorized across topk -------
    sim_key = _packed_key(sim, rev_row, hi_mask)                      # (n,topk_pad)
    sim_key = jnp.where(is_top, SENT, sim_key)        # top rows never eligible
    taken = jnp.zeros((n, topk_pad), jnp.bool_)
    for _ in range(kk):           # kk <= kernel (small): one reduction / step
        cur = jnp.where(taken, SENT, sim_key)
        m = jnp.max(cur, axis=0, keepdims=True)                       # (1,topk_pad)
        taken = jnp.logical_or(taken, cur == m)        # unique hit per column
    valid_cols = lane_ids_k < topk                     # ignore padded selectors
    hit = jnp.where(jnp.logical_and(taken, valid_cols),
                    jnp.int32(1), jnp.int32(0))
    drop_sim = jnp.max(hit, axis=1, keepdims=True) > 0                # (n,1)

    # ---- phase 4: mask, rescale, store (re-read x_ref; one f32 mul/elem) ---
    dropped = jnp.logical_or(is_top, drop_sim)
    keep = jnp.where(dropped, jnp.float32(0.0), jnp.float32(1.0))     # (n,1)
    kept = jnp.sum(keep, keepdims=True)                               # (1,1)
    # NOTE: like the torch reference this is inf if every row is dropped
    # (reachable when topk*(kernel+1) >= n); callers should avoid that regime.
    ratio = jnp.float32(n) * pl.reciprocal(kept, approx=False)
    factor = keep * ratio                                             # (n,1)
    o_ref[...] = (x_ref[...].astype(jnp.float32) * factor).astype(o_ref.dtype)


def mildropout_forward(x, *, topk=3, kernel=7, training=True,
                       mxu_dtype=None, donate_input=False):
    """Pallas-TPU implementation of mildropout.forward on a (N, F) input.

    mxu_dtype: dtype of the gather / similarity matmul operands. None (default)
      -> bf16 for bf16 inputs, f32 for f32 inputs. Pass jnp.bfloat16 on v6e/v7x
      to run f32 inputs at the full bf16 MXU rate (tiny risk of ranking flips
      on near-tied similarities vs. the torch reference).
    donate_input: alias the output onto x (input_output_aliases={0: 0}); only
      useful when the caller actually donates x.
    """
    n, f = x.shape
    if (not training) or n == 1 or topk == 0:
        return x

    topk_eff = min(topk, n)
    kk = max(0, min(kernel, n - topk_eff))     # torch's [:, :kernel] saturates
    topk_pad = -(-topk_eff // 8) * 8           # sublane-align the selector block
    idx_bits = max(1, (n - 1).bit_length())    # tie-break index bits in the key

    if mxu_dtype is None:
        mxu_dtype = jnp.bfloat16 if x.dtype == jnp.bfloat16 else jnp.float32
    mxu_dtype = jnp.dtype(mxu_dtype)

    kern = functools.partial(_mildropout_kernel, topk=topk_eff, kk=kk,
                             topk_pad=topk_pad, idx_bits=idx_bits,
                             mm_dtype=mxu_dtype)

    # Whole (n, f) block is VMEM-resident (single grid point). Budget: in + out
    # blocks, one short-lived f32 temp, an mm_dtype copy only if it differs
    # from the input dtype, plus headroom for the small selection state.
    itemsize = jnp.dtype(x.dtype).itemsize
    extra_mm = 0 if mxu_dtype == x.dtype else n * f * mxu_dtype.itemsize
    vmem_need = 2 * n * f * itemsize + n * f * 4 + extra_mm + (4 << 20)
    try:
        vmem_cap = int(pltpu.get_tpu_info().vmem_capacity_bytes)
    except Exception:                          # info query is best-effort
        vmem_cap = 128 << 20
    vmem_limit = int(min(max(vmem_need, 32 << 20), int(vmem_cap * 0.9)))
    # TODO(synk): if vmem_need > 0.9*vmem_cap (v7x: 64 MiB) fall back to the
    # F-tiled two-pass structure described in the header.

    call_kwargs = {}
    if donate_input:
        call_kwargs["input_output_aliases"] = {0: 0}

    return pl.pallas_call(
        kern,
        out_shape=jax.ShapeDtypeStruct((n, f), x.dtype),
        in_specs=[pl.BlockSpec((n, f), lambda: (0, 0))],
        out_specs=pl.BlockSpec((n, f), lambda: (0, 0)),
        compiler_params=pltpu.CompilerParams(vmem_limit_bytes=vmem_limit),
        **call_kwargs,
    )(x)


# ---------------- pure-numpy reference (mirrors the torch code) ----------------
def _ref_mildropout(x, topk, kernel):
    x = np.asarray(x, dtype=np.float64)
    n, f = x.shape
    if n == 1 or topk == 0:
        return x
    imp = 1.0 / (1.0 + np.exp(-x.mean(axis=1)))
    order = np.argsort(-imp, kind="stable")
    idx, remain = order[:topk], order[topk:]
    x1 = x[idx] / np.maximum(np.linalg.norm(x[idx], axis=1, keepdims=True), 1e-12)
    x2 = x[remain] / np.maximum(np.linalg.norm(x[remain], axis=1, keepdims=True), 1e-12)
    A = x1 @ x2.T
    ordA = np.argsort(-A, axis=1, kind="stable")
    delete = np.unique(ordA[:, :kernel].reshape(-1))
    total = np.concatenate([remain[delete], idx])
    mask = np.zeros((n,))
    mask[total] += 1.0
    mask = 1.0 - mask
    ratio = n / mask.sum()
    return x * mask[:, None] * ratio


if __name__ == "__main__":
    key = jax.random.PRNGKey(0)
    n, f = 32, 64          # small shapes; (n - topk) > topk*kernel avoids all-drop
    topk, kernel = 3, 7
    x = jax.random.normal(key, (n, f), dtype=jnp.float32)

    y = mildropout_forward(x, topk=topk, kernel=kernel, training=True)
    y = jax.block_until_ready(y)

    y_ref = _ref_mildropout(np.array(x), topk, kernel)
    assert np.allclose(np.array(y, dtype=np.float64), y_ref, rtol=1e-3, atol=1e-3), (
        "Pallas kernel output does not match reference")

    print("KERNEL_OK")
</pallas_src>

<mosaic_0001>
module attributes {stable_mosaic.version = 11 : i64} {
  func.func @_mildropout_kernel(%arg0: memref<32x64xf32, #tpu.memory_space<vmem>>, %arg1: memref<32x64xf32, #tpu.memory_space<vmem>>) attributes {dimension_semantics = [], scalar_prefetch = 0 : i64, scratch_operands = 0 : i64, tpu.core_type = #tpu.core_type<tc>} {
    %0 = tpu.iota {dimensions = array<i32: 0>} : vector<32x1xi32>
    %c31_i32 = arith.constant 31 : i32
    %1 = vector.broadcast %c31_i32 : i32 to vector<32x1xi32>
    %2 = arith.subi %1, %0 : vector<32x1xi32>
    %3 = tpu.iota {dimensions = array<i32: 0>} : vector<8x32xi32>
    %4 = tpu.iota {dimensions = array<i32: 1>} : vector<8x32xi32>
    %5 = tpu.iota {dimensions = array<i32: 1>} : vector<1x8xi32>
    %c0 = arith.constant 0 : index
    %c0_0 = arith.constant 0 : index
    %6 = vector.load %arg0[%c0, %c0_0] : memref<32x64xf32, #tpu.memory_space<vmem>>, vector<32x64xf32>
    %cst = arith.constant dense<0.000000e+00> : vector<32xf32>
    %7 = vector.multi_reduction <add>, %6, %cst [1] : vector<32x64xf32> to vector<32xf32>
    %8 = vector.shape_cast %7 : vector<32xf32> to vector<32x1xf32>
    %9 = arith.mulf %6, %6 : vector<32x64xf32>
    %cst_1 = arith.constant dense<0.000000e+00> : vector<32xf32>
    %10 = vector.multi_reduction <add>, %9, %cst_1 [1] : vector<32x64xf32> to vector<32xf32>
    %11 = vector.shape_cast %10 : vector<32xf32> to vector<32x1xf32>
    %cst_2 = arith.constant 1.000000e-24 : f32
    %12 = vector.broadcast %cst_2 : f32 to vector<32x1xf32>
    %13 = arith.maximumf %11, %12 : vector<32x1xf32>
    %14 = math.rsqrt %13 : vector<32x1xf32>
    %c0_3 = arith.constant 0 : index
    %c0_4 = arith.constant 0 : index
    %15 = vector.load %arg0[%c0_3, %c0_4] : memref<32x64xf32, #tpu.memory_space<vmem>>, vector<32x64xf32>
    %16 = tpu.bitcast %8 : vector<32x1xf32> -> vector<32x1xi32>
    %c0_i32 = arith.constant 0 : i32
    %17 = vector.broadcast %c0_i32 : i32 to vector<32x1xi32>
    %18 = arith.cmpi slt, %16, %17 : vector<32x1xi32>
    %c2147483647_i32 = arith.constant 2147483647 : i32
    %19 = vector.broadcast %c2147483647_i32 : i32 to vector<32x1xi32>
    %20 = arith.xori %16, %19 : vector<32x1xi32>
    %21 = arith.select %18, %20, %16 : vector<32x1xi1>, vector<32x1xi32>
    %c-32_i32 = arith.constant -32 : i32
    %22 = vector.broadcast %c-32_i32 : i32 to vector<32x1xi32>
    %23 = arith.andi %21, %22 : vector<32x1xi32>
    %24 = arith.ori %23, %2 : vector<32x1xi32>
    %false = arith.constant false
    %25 = vector.broadcast %false : i1 to vector<32x1xi1>
    %cst_5 = arith.constant 0.000000e+00 : f32
    %26 = vector.broadcast %cst_5 : f32 to vector<8x32xf32>
    %c-2147483648_i32 = arith.constant -2147483648 : i32
    %27 = vector.broadcast %c-2147483648_i32 : i32 to vector<32x1xi32>
    %28 = arith.select %25, %27, %24 : vector<32x1xi1>, vector<32x1xi32>
    %cst_6 = arith.constant dense<-2147483648> : vector<1xi32>
    %29 = vector.multi_reduction <maxsi>, %28, %cst_6 [0] : vector<32x1xi32> to vector<1xi32>
    %30 = vector.shape_cast %29 : vector<1xi32> to vector<1x1xi32>
    %c31_i32_7 = arith.constant 31 : i32
    %31 = vector.broadcast %c31_i32_7 : i32 to vector<1x1xi32>
    %32 = arith.andi %30, %31 : vector<1x1xi32>
    %c31_i32_8 = arith.constant 31 : i32
    %33 = vector.broadcast %c31_i32_8 : i32 to vector<1x1xi32>
    %34 = arith.subi %33, %32 : vector<1x1xi32>
    %35 = vector.broadcast %34 : vector<1x1xi32> to vector<32x1xi32>
    %36 = arith.cmpi eq, %0, %35 : vector<32x1xi32>
    %37 = arith.ori %25, %36 : vector<32x1xi1>
    %c0_i32_9 = arith.constant 0 : i32
    %38 = vector.broadcast %c0_i32_9 : i32 to vector<8x32xi32>
    %39 = arith.cmpi eq, %3, %38 : vector<8x32xi32>
    %40 = vector.broadcast %34 : vector<1x1xi32> to vector<8x32xi32>
    %41 = arith.cmpi eq, %4, %40 : vector<8x32xi32>
    %42 = arith.andi %39, %41 : vector<8x32xi1>
    %cst_10 = arith.constant 1.000000e+00 : f32
    %43 = vector.broadcast %cst_10 : f32 to vector<8x32xf32>
    %44 = arith.select %42, %43, %26 : vector<8x32xi1>, vector<8x32xf32>
    %c-2147483648_i32_11 = arith.constant -2147483648 : i32
    %45 = vector.broadcast %c-2147483648_i32_11 : i32 to vector<32x1xi32>
    %46 = arith.select %37, %45, %24 : vector<32x1xi1>, vector<32x1xi32>
    %cst_12 = arith.constant dense<-2147483648> : vector<1xi32>
    %47 = vector.multi_reduction <maxsi>, %46, %cst_12 [0] : vector<32x1xi32> to vector<1xi32>
    %48 = vector.shape_cast %47 : vector<1xi32> to vector<1x1xi32>
    %c31_i32_13 = arith.constant 31 : i32
    %49 = vector.broadcast %c31_i32_13 : i32 to vector<1x1xi32>
    %50 = arith.andi %48, %49 : vector<1x1xi32>
    %c31_i32_14 = arith.constant 31 : i32
    %51 = vector.broadcast %c31_i32_14 : i32 to vector<1x1xi32>
    %52 = arith.subi %51, %50 : vector<1x1xi32>
    %53 = vector.broadcast %52 : vector<1x1xi32> to vector<32x1xi32>
    %54 = arith.cmpi eq, %0, %53 : vector<32x1xi32>
    %55 = arith.ori %37, %54 : vector<32x1xi1>
    %c1_i32 = arith.constant 1 : i32
    %56 = vector.broadcast %c1_i32 : i32 to vector<8x32xi32>
    %57 = arith.cmpi eq, %3, %56 : vector<8x32xi32>
    %58 = vector.broadcast %52 : vector<1x1xi32> to vector<8x32xi32>
    %59 = arith.cmpi eq, %4, %58 : vector<8x32xi32>
    %60 = arith.andi %57, %59 : vector<8x32xi1>
    %cst_15 = arith.constant 1.000000e+00 : f32
    %61 = vector.broadcast %cst_15 : f32 to vector<8x32xf32>
    %62 = arith.select %60, %61, %44 : vector<8x32xi1>, vector<8x32xf32>
    %c-2147483648_i32_16 = arith.constant -2147483648 : i32
    %63 = vector.broadcast %c-2147483648_i32_16 : i32 to vector<32x1xi32>
    %64 = arith.select %55, %63, %24 : vector<32x1xi1>, vector<32x1xi32>
    %cst_17 = arith.constant dense<-2147483648> : vector<1xi32>
    %65 = vector.multi_reduction <maxsi>, %64, %cst_17 [0] : vector<32x1xi32> to vector<1xi32>
    %66 = vector.shape_cast %65 : vector<1xi32> to vector<1x1xi32>
    %c31_i32_18 = arith.constant 31 : i32
    %67 = vector.broadcast %c31_i32_18 : i32 to vector<1x1xi32>
    %68 = arith.andi %66, %67 : vector<1x1xi32>
    %c31_i32_19 = arith.constant 31 : i32
    %69 = vector.broadcast %c31_i32_19 : i32 to vector<1x1xi32>
    %70 = arith.subi %69, %68 : vector<1x1xi32>
    %71 = vector.broadcast %70 : vector<1x1xi32> to vector<32x1xi32>
    %72 = arith.cmpi eq, %0, %71 : vector<32x1xi32>
    %73 = arith.ori %55, %72 : vector<32x1xi1>
    %c2_i32 = arith.constant 2 : i32
    %74 = vector.broadcast %c2_i32 : i32 to vector<8x32xi32>
    %75 = arith.cmpi eq, %3, %74 : vector<8x32xi32>
    %76 = vector.broadcast %70 : vector<1x1xi32> to vector<8x32xi32>
    %77 = arith.cmpi eq, %4, %76 : vector<8x32xi32>
    %78 = arith.andi %75, %77 : vector<8x32xi1>
    %cst_20 = arith.constant 1.000000e+00 : f32
    %79 = vector.broadcast %cst_20 : f32 to vector<8x32xf32>
    %80 = arith.select %78, %79, %62 : vector<8x32xi1>, vector<8x32xf32>
    %cst_21 = arith.constant dense<0.000000e+00> : vector<8x64xf32>
    %81 = tpu.matmul %80, %15, %cst_21 {dimension_numbers = #tpu.dot_dimension_numbers<[1], [0], [0], [1], [0, 0, 1, 1], [], []>} : vector<8x32xf32>, vector<32x64xf32>, vector<8x64xf32> -> vector<8x64xf32>
    %82 = arith.mulf %81, %81 : vector<8x64xf32>
    %cst_22 = arith.constant dense<0.000000e+00> : vector<8xf32>
    %83 = vector.multi_reduction <add>, %82, %cst_22 [1] : vector<8x64xf32> to vector<8xf32>
    %84 = vector.shape_cast %83 : vector<8xf32> to vector<8x1xf32>
    %cst_23 = arith.constant 1.000000e-24 : f32
    %85 = vector.broadcast %cst_23 : f32 to vector<8x1xf32>
    %86 = arith.maximumf %84, %85 : vector<8x1xf32>
    %87 = math.rsqrt %86 : vector<8x1xf32>
    %88 = vector.broadcast %87 : vector<8x1xf32> to vector<8x64xf32>
    %89 = arith.mulf %81, %88 : vector<8x64xf32>
    %cst_24 = arith.constant dense<0.000000e+00> : vector<32x8xf32>
    %90 = tpu.matmul %15, %89, %cst_24 {dimension_numbers = #tpu.dot_dimension_numbers<[1], [1], [0], [0], [0, 0, 1, 0], [], []>} : vector<32x64xf32>, vector<8x64xf32>, vector<32x8xf32> -> vector<32x8xf32>
    %91 = vector.broadcast %14 : vector<32x1xf32> to vector<32x8xf32>
    %92 = arith.mulf %90, %91 : vector<32x8xf32>
    %93 = tpu.bitcast %92 : vector<32x8xf32> -> vector<32x8xi32>
    %c0_i32_25 = arith.constant 0 : i32
    %94 = vector.broadcast %c0_i32_25 : i32 to vector<32x8xi32>
    %95 = arith.cmpi slt, %93, %94 : vector<32x8xi32>
    %c2147483647_i32_26 = arith.constant 2147483647 : i32
    %96 = vector.broadcast %c2147483647_i32_26 : i32 to vector<32x8xi32>
    %97 = arith.xori %93, %96 : vector<32x8xi32>
    %98 = arith.select %95, %97, %93 : vector<32x8xi1>, vector<32x8xi32>
    %c-32_i32_27 = arith.constant -32 : i32
    %99 = vector.broadcast %c-32_i32_27 : i32 to vector<32x8xi32>
    %100 = arith.andi %98, %99 : vector<32x8xi32>
    %101 = vector.broadcast %2 : vector<32x1xi32> to vector<32x8xi32>
    %102 = arith.ori %100, %101 : vector<32x8xi32>
    %c-2147483648_i32_28 = arith.constant -2147483648 : i32
    %103 = vector.shape_cast %73 : vector<32x1xi1> to vector<32x1xi1>
    %104 = vector.broadcast %103 : vector<32x1xi1> to vector<32x8xi1>
    %105 = vector.broadcast %c-2147483648_i32_28 : i32 to vector<32x8xi32>
    %106 = arith.select %104, %105, %102 : vector<32x8xi1>, vector<32x8xi32>
    %false_29 = arith.constant false
    %107 = vector.broadcast %false_29 : i1 to vector<32x8xi1>
    %c-2147483648_i32_30 = arith.constant -2147483648 : i32
    %108 = vector.broadcast %c-2147483648_i32_30 : i32 to vector<32x8xi32>
    %109 = arith.select %107, %108, %106 : vector<32x8xi1>, vector<32x8xi32>
    %cst_31 = arith.constant dense<-2147483648> : vector<8xi32>
    %110 = vector.multi_reduction <maxsi>, %109, %cst_31 [0] : vector<32x8xi32> to vector<8xi32>
    %111 = vector.shape_cast %110 : vector<8xi32> to vector<1x8xi32>
    %112 = vector.broadcast %111 : vector<1x8xi32> to vector<32x8xi32>
    %113 = arith.cmpi eq, %109, %112 : vector<32x8xi32>
    %114 = arith.ori %107, %113 : vector<32x8xi1>
    %c-2147483648_i32_32 = arith.constant -2147483648 : i32
    %115 = vector.broadcast %c-2147483648_i32_32 : i32 to vector<32x8xi32>
    %116 = arith.select %114, %115, %106 : vector<32x8xi1>, vector<32x8xi32>
    %cst_33 = arith.constant dense<-2147483648> : vector<8xi32>
    %117 = vector.multi_reduction <maxsi>, %116, %cst_33 [0] : vector<32x8xi32> to vector<8xi32>
    %118 = vector.shape_cast %117 : vector<8xi32> to vector<1x8xi32>
    %119 = vector.broadcast %118 : vector<1x8xi32> to vector<32x8xi32>
    %120 = arith.cmpi eq, %116, %119 : vector<32x8xi32>
    %121 = arith.ori %114, %120 : vector<32x8xi1>
    %c-2147483648_i32_34 = arith.constant -2147483648 : i32
    %122 = vector.broadcast %c-2147483648_i32_34 : i32 to vector<32x8xi32>
    %123 = arith.select %121, %122, %106 : vector<32x8xi1>, vector<32x8xi32>
    %cst_35 = arith.constant dense<-2147483648> : vector<8xi32>
    %124 = vector.multi_reduction <maxsi>, %123, %cst_35 [0] : vector<32x8xi32> to vector<8xi32>
    %125 = vector.shape_cast %124 : vector<8xi32> to vector<1x8xi32>
    %126 = vector.broadcast %125 : vector<1x8xi32> to vector<32x8xi32>
    %127 = arith.cmpi eq, %123, %126 : vector<32x8xi32>
    %128 = arith.ori %121, %127 : vector<32x8xi1>
    %c-2147483648_i32_36 = arith.constant -2147483648 : i32
    %129 = vector.broadcast %c-2147483648_i32_36 : i32 to vector<32x8xi32>
    %130 = arith.select %128, %129, %106 : vector<32x8xi1>, vector<32x8xi32>
    %cst_37 = arith.constant dense<-2147483648> : vector<8xi32>
    %131 = vector.multi_reduction <maxsi>, %130, %cst_37 [0] : vector<32x8xi32> to vector<8xi32>
    %132 = vector.shape_cast %131 : vector<8xi32> to vector<1x8xi32>
    %133 = vector.broadcast %132 : vector<1x8xi32> to vector<32x8xi32>
    %134 = arith.cmpi eq, %130, %133 : vector<32x8xi32>
    %135 = arith.ori %128, %134 : vector<32x8xi1>
    %c-2147483648_i32_38 = arith.constant -2147483648 : i32
    %136 = vector.broadcast %c-2147483648_i32_38 : i32 to vector<32x8xi32>
    %137 = arith.select %135, %136, %106 : vector<32x8xi1>, vector<32x8xi32>
    %cst_39 = arith.constant dense<-2147483648> : vector<8xi32>
    %138 = vector.multi_reduction <maxsi>, %137, %cst_39 [0] : vector<32x8xi32> to vector<8xi32>
    %139 = vector.shape_cast %138 : vector<8xi32> to vector<1x8xi32>
    %140 = vector.broadcast %139 : vector<1x8xi32> to vector<32x8xi32>
    %141 = arith.cmpi eq, %137, %140 : vector<32x8xi32>
    %142 = arith.ori %135, %141 : vector<32x8xi1>
    %c-2147483648_i32_40 = arith.constant -2147483648 : i32
    %143 = vector.broadcast %c-2147483648_i32_40 : i32 to vector<32x8xi32>
    %144 = arith.select %142, %143, %106 : vector<32x8xi1>, vector<32x8xi32>
    %cst_41 = arith.constant dense<-2147483648> : vector<8xi32>
    %145 = vector.multi_reduction <maxsi>, %144, %cst_41 [0] : vector<32x8xi32> to vector<8xi32>
    %146 = vector.shape_cast %145 : vector<8xi32> to vector<1x8xi32>
    %147 = vector.broadcast %146 : vector<1x8xi32> to vector<32x8xi32>
    %148 = arith.cmpi eq, %144, %147 : vector<32x8xi32>
    %149 = arith.ori %142, %148 : vector<32x8xi1>
    %c-2147483648_i32_42 = arith.constant -2147483648 : i32
    %150 = vector.broadcast %c-2147483648_i32_42 : i32 to vector<32x8xi32>
    %151 = arith.select %149, %150, %106 : vector<32x8xi1>, vector<32x8xi32>
    %cst_43 = arith.constant dense<-2147483648> : vector<8xi32>
    %152 = vector.multi_reduction <maxsi>, %151, %cst_43 [0] : vector<32x8xi32> to vector<8xi32>
    %153 = vector.shape_cast %152 : vector<8xi32> to vector<1x8xi32>
    %154 = vector.broadcast %153 : vector<1x8xi32> to vector<32x8xi32>
    %155 = arith.cmpi eq, %151, %154 : vector<32x8xi32>
    %156 = arith.ori %149, %155 : vector<32x8xi1>
    %c3_i32 = arith.constant 3 : i32
    %157 = vector.broadcast %c3_i32 : i32 to vector<1x8xi32>
    %158 = arith.cmpi slt, %5, %157 : vector<1x8xi32>
    %159 = vector.broadcast %158 : vector<1x8xi1> to vector<32x8xi1>
    %160 = arith.andi %156, %159 : vector<32x8xi1>
    %c1_i32_44 = arith.constant 1 : i32
    %c0_i32_45 = arith.constant 0 : i32
    %161 = vector.broadcast %c1_i32_44 : i32 to vector<32x8xi32>
    %162 = vector.broadcast %c0_i32_45 : i32 to vector<32x8xi32>
    %163 = arith.select %160, %161, %162 : vector<32x8xi1>, vector<32x8xi32>
    %cst_46 = arith.constant dense<-2147483648> : vector<32xi32>
    %164 = vector.multi_reduction <maxsi>, %163, %cst_46 [1] : vector<32x8xi32> to vector<32xi32>
    %165 = vector.shape_cast %164 : vector<32xi32> to vector<32x1xi32>
    %c0_i32_47 = arith.constant 0 : i32
    %166 = vector.broadcast %c0_i32_47 : i32 to vector<32x1xi32>
    %167 = arith.cmpi sgt, %165, %166 : vector<32x1xi32>
    %168 = arith.ori %73, %167 : vector<32x1xi1>
    %cst_48 = arith.constant 0.000000e+00 : f32
    %cst_49 = arith.constant 1.000000e+00 : f32
    %169 = vector.broadcast %cst_48 : f32 to vector<32x1xf32>
    %170 = vector.broadcast %cst_49 : f32 to vector<32x1xf32>
    %171 = arith.select %168, %169, %170 : vector<32x1xi1>, vector<32x1xf32>
    %172 = vector.shape_cast %171 : vector<32x1xf32> to vector<1x32x1xf32>
    %cst_50 = arith.constant dense<0.000000e+00> : vector<1xf32>
    %173 = vector.multi_reduction <add>, %172, %cst_50 [1, 2] : vector<1x32x1xf32> to vector<1xf32>
    %174 = vector.shape_cast %173 : vector<1xf32> to vector<1x1x1xf32>
    %175 = vector.extract %174[0, 0, 0] : f32 from vector<1x1x1xf32>
    %176 = vector.broadcast %175 : f32 to vector<1x1xf32>
    %177 = tpu.reciprocal %176 : vector<1x1xf32> -> vector<1x1xf32>
    %cst_51 = arith.constant 3.200000e+01 : f32
    %178 = vector.broadcast %cst_51 : f32 to vector<1x1xf32>
    %179 = arith.mulf %178, %177 : vector<1x1xf32>
    %180 = vector.broadcast %179 : vector<1x1xf32> to vector<32x1xf32>
    %181 = arith.mulf %171, %180 : vector<32x1xf32>
    %c0_52 = arith.constant 0 : index
    %c0_53 = arith.constant 0 : index
    %182 = vector.load %arg0[%c0_52, %c0_53] : memref<32x64xf32, #tpu.memory_space<vmem>>, vector<32x64xf32>
    %183 = vector.broadcast %181 : vector<32x1xf32> to vector<32x64xf32>
    %184 = arith.mulf %182, %183 : vector<32x64xf32>
    %c0_54 = arith.constant 0 : index
    %c0_55 = arith.constant 0 : index
    %185 = vector.load %arg1[%c0_54, %c0_55] : memref<32x64xf32, #tpu.memory_space<vmem>>, vector<32x64xf32>
    tpu.vector_store %arg1[%c0_54, %c0_55], %184 {strides = array<i32>} : memref<32x64xf32, #tpu.memory_space<vmem>>, vector<32x64xf32>,
    return
  }
}

</mosaic_0001>

<bundles_post_ra>
// kernel: tpu_custom_call.1
= control target key start
LH: loop header
LB: loop body
LE: loop exit
PB: predicated region body
PF: predicated region fallthrough
CT: control target
= control target key end

     0   :  { %6 = vsyncpa [#allocation3], 0  ;;  %s1361_s0 = inlined_call_operand.hbm [shape: f32[32,64], index: 0, kind: input, shape index: {}]   ;;  %s1362_s1 = inlined_call_operand.hbm [shape: f32[32,64], index: 1, kind: output, shape index: {}]  }
   0x1   :  { %7 = vsyncpa [#allocation4], 0  ;;  %s869_s6 = smov [#allocation2]   ;;  %s821_s10 = scalar_lea.hbm %s1361_s0, 512 }
   0x2   :  { %s13_s7 = sshll.u32 %s869_s6, 4  ;;  %p822_p0 = scmp.ne.s32.totalorder %s1361_s0, %s821_s10  ;;  %s14_s7 = int_to_ptr.vmem [resolvable:$true] %s13_s7 }
   0x3   :  { %p825_p1 = scmp.lt.u32.totalorder %s821_s10, %s1361_s0 }
   0x5   :  { %p827_p2 = pnand %p825_p1, %p822_p0 }
   0x7   :  { %830 = shalt.err (!%p827_p2)
}
   0x8   :  { %s831_s15 = scalar_lea.vmem %s14_s7, 512  ;;  %p836_p4 = scmp.lt.s32.totalorder %s14_s7, %s14_s7 }
   0x9   :  { %p832_p3 = scmp.ne.s32.totalorder %s14_s7, %s831_s15  ;;  %p837_p5 = scmp.lt.s32.totalorder %s831_s15, %s831_s15 }
   0xb   :  { %p838_p6 = por %p837_p5, %p836_p4 }
   0xd   :  { %p839_p7 = pnand %p838_p6, %p832_p3 }
   0xf   :  { %842 = shalt.err (!%p839_p7)
}
  0x10   :  { %s870_s16 = smov 128   ;;  %s871_s17 = smov 8  }
  0x11   :  { %19 = dma.hbm_to_vmem [thread:$0]  %s1361_s0, 512, %s14_s7, [#allocation3], %s870_s16, %s870_s16, %s871_s17  }
  0x12   :  { %865 = dma.done.wait [#allocation3], 512  }
  0x13   :  { %866 = vsyncadd [#allocation3], 4294966784  ;;  %vm1363_vm0 = vcmask 523264   ;;  %v903_v0 = vld [vmem:[#allocation2 + $0x10] sm:$0xff]  ;;  %v905_v1 = vld [vmem:[#allocation2] sm:$0xff]  ;;  %v872_v9 = vmov 0.0|0.0   ;;  %v23_v12 = vlaneseq }
  0x14   :  { %v907_v2 = vld [vmem:[#allocation2 + $0x18] sm:$0xff]  ;;  %v45_v3 = vsel %vm1363_vm0, %v903_v0, 0.0  ;;  %v39_v4 = vsel %vm1363_vm0, %v905_v1, 0.0  ;;  %v913_v5 = vld [vmem:[#allocation2 + $0x8] sm:$0xff]  ;;  %782 = vmatprep.mubr.msk.f32.mxu1 %vm1363_vm0, %v905_v1  ;;  %788 = vmatprep.subr.bf16.mxu0 %v872_v9  ;;  %vm873_vm1 = vmmov 0   ;;  %v874_v10 = vmov 0.0  }
  0x15   :  { %46 = vadd.xlane.f32.xlu1 %v45_v3  ;;  %40 = vadd.xlane.f32.xlu0 %v39_v4  ;;  %v48_v6 = vsel %vm1363_vm0, %v907_v2, 0.0  ;;  %v42_v7 = vsel %vm1363_vm0, %v913_v5, 0.0  ;;  %v789_v8 = vpack.c.bf16 %v913_v5, %v905_v1  ;;  %v792_v11 = vpack.c.bf16 %v907_v2, %v903_v0  ;;  %s877_s20 = smov [#allocation5]  }
  0x16   :  { %777 = vmatprep.mubr.msk.f32.mxu0 %vm873_vm1, %v874_v10  ;;  %v927_v13 = vshrl.u32 %v23_v12, 7  ;;  %s741_s21 = sshll.u32 %s877_s20, 4  ;;  %s742_s21 = int_to_ptr.vmem [resolvable:$true] %s741_s21 }
  0x17   :  { %790 = vmatpush3.bf16.msra.mxu0 %v789_v8  ;;  %s843_s22 = scalar_lea.vmem %s742_s21, 512  ;;  %p848_p9 = scmp.lt.s32.totalorder %s742_s21, %s742_s21 }
  0x18   :  { %791 = vmatprep.subr.bf16.mxu0 %v872_v9  ;;  %v930_v14 = vadd.s32 16, %v927_v13  ;;  %v933_v19 = vadd.s32 24, %v927_v13  ;;  %v936_v20 = vadd.s32 8, %v927_v13  ;;  %v28_v24 = vsub.s32 31, %v927_v13  ;;  %p844_p8 = scmp.ne.s32.totalorder %s742_s21, %s843_s22  ;;  %p849_p10 = scmp.lt.s32.totalorder %s843_s22, %s843_s22 }
  0x19   :  { %49 = vadd.xlane.f32.xlu1 %v48_v6  ;;  %43 = vadd.xlane.f32.xlu0 %v42_v7 }
  0x1a   :  { %v30_v23 = vsub.s32 31, %v930_v14  ;;  %v31_v31 = vsub.s32 31, %v933_v19  ;;  %v29_v32 = vsub.s32 31, %v936_v20  ;;  %p850_p11 = por %p849_p10, %p848_p9 }
  0x1b   :  { %793 = vmatpush3.bf16.msra.mxu0 %v792_v11  ;;  %v1377_v11 = vmov 0 }
  0x1c   :  { %p851_p12 = pnand %p850_p11, %p844_p8 }
  0xa2   :  { %v47_v15 = vpop.xlane.xlu1 %46  ;;  %v41_v16 = vpop.xlane.xlu0 %40 }
  0xa3   :  { %vm81_vm2 = vcmp.lt.s32.totalorder %v47_v15, 0  ;;  %v85_v17 = vxor.u32 2147483647, %v47_v15  ;;  %vm79_vm3 = vcmp.lt.s32.totalorder %v41_v16, 0  ;;  %v83_v18 = vxor.u32 2147483647, %v41_v16 }
  0xa5   :  { %v89_v21 = vsel %vm81_vm2, %v85_v17, %v47_v15  ;;  %v87_v22 = vsel %vm79_vm3, %v83_v18, %v41_v16  ;;  %v1379_v16 = vmov 0 }
  0xa6   :  { %v50_v25 = vpop.xlane.xlu1 %49  ;;  %v44_v26 = vpop.xlane.xlu0 %43  ;;  %v93_v29 = vand.u32 4294967264, %v89_v21  ;;  %v91_v30 = vand.u32 4294967264, %v87_v22 }
  0xa7   :  { %vm82_vm4 = vcmp.lt.s32.totalorder %v50_v25, 0  ;;  %v86_v27 = vxor.u32 2147483647, %v50_v25  ;;  %vm80_vm5 = vcmp.lt.s32.totalorder %v44_v26, 0  ;;  %v84_v28 = vxor.u32 2147483647, %v44_v26 }
  0xa8   :  { %v97_v37 = vor.u32 %v93_v29, %v30_v23  ;;  %v95_v38 = vor.u32 %v91_v30, %v28_v24  ;;  %v999_v29 = vand.u32 127, %v23_v12 }
  0xa9   :  { %v90_v33 = vsel %vm82_vm4, %v86_v27, %v50_v25  ;;  %v88_v34 = vsel %vm80_vm5, %v84_v28, %v44_v26 }
  0xaa   :  { %v94_v35 = vand.u32 4294967264, %v90_v33  ;;  %v92_v36 = vand.u32 4294967264, %v88_v34 }
  0xac   :  { %v98_v39 = vor.u32 %v94_v35, %v31_v31  ;;  %v96_v40 = vor.u32 %v92_v36, %v29_v32 }
  0xae   :  { %vm101_vm6 = vcmp.gt.s32.totalorder %v97_v37, %v98_v39  ;;  %vm99_vm7 = vcmp.gt.s32.totalorder %v95_v38, %v96_v40 }
  0xaf   :  { %v102_v41 = vsel %vm101_vm6, %v97_v37, %v98_v39  ;;  %v100_v42 = vsel %vm99_vm7, %v95_v38, %v96_v40 }
  0xb0   :  { %vm103_vm8 = vcmp.gt.s32.totalorder %v100_v42, %v102_v41 }
  0xb1   :  { %v104_v43 = vsel %vm103_vm8, %v100_v42, %v102_v41  ;;  %v1389_v41 = vmov 0 }
  0xb2   :  { %v105_v44 = vrot.slane %v104_v43, 4 }
  0xb4   :  { %vm106_vm9 = vcmp.gt.s32.totalorder %v104_v43, %v105_v44 }
  0xb5   :  { %v107_v45 = vsel %vm106_vm9, %v104_v43, %v105_v44 }
  0xb6   :  { %v108_v46 = vrot.slane %v107_v45, 2 }
  0xb8   :  { %vm109_vm10 = vcmp.gt.s32.totalorder %v107_v45, %v108_v46 }
  0xb9   :  { %v110_v47 = vsel %vm109_vm10, %v107_v45, %v108_v46  ;;  %v52_v46 = vmul.f32 %v913_v5, %v913_v5 }
  0xba   :  { %v111_v48 = vrot.slane %v110_v47, 1 }
  0xbc   :  { %vm112_vm11 = vcmp.gt.s32.totalorder %v110_v47, %v111_v48 }
  0xbd   :  { %v113_v49 = vsel %vm112_vm11, %v110_v47, %v111_v48  ;;  %v51_v47 = vmul.f32 %v905_v1, %v905_v1  ;;  %v54_v48 = vmul.f32 %v907_v2, %v907_v2 }
  0xbe   :  { %v114_v50 = vand.u32 31, %v113_v49  ;;  %v53_v49 = vmul.f32 %v903_v0, %v903_v0 }
  0xc0   :  { %v115_v51 = vsub.s32 31, %v114_v50 }
  0xc2   :  { %vm116_vm12 = vcmp.eq.s32.totalorder %v927_v13, %v115_v51  ;;  %vm117_vm13 = vcmp.eq.s32.totalorder %v936_v20, %v115_v51  ;;  %vm118_vm14 = vcmp.eq.s32.totalorder %v930_v14, %v115_v51  ;;  %vm119_vm15 = vcmp.eq.s32.totalorder %v933_v19, %v115_v51 }
  0xc3   :  { %v124_v52 = vsel %vm116_vm12, 2147483648, %v95_v38  ;;  %v125_v53 = vsel %vm117_vm13, 2147483648, %v96_v40  ;;  %v126_v54 = vsel %vm118_vm14, 2147483648, %v97_v37  ;;  %v127_v55 = vsel %vm119_vm15, 2147483648, %v98_v39 }
  0xc4   :  { %vm128_vm1 = vcmp.gt.s32.totalorder %v124_v52, %v125_v53  ;;  %vm130_vm2 = vcmp.gt.s32.totalorder %v126_v54, %v127_v55 }
  0xc5   :  { %v129_v56 = vsel %vm128_vm1, %v124_v52, %v125_v53  ;;  %v131_v57 = vsel %vm130_vm2, %v126_v54, %v127_v55 }
  0xc6   :  { %vm132_vm3 = vcmp.gt.s32.totalorder %v129_v56, %v131_v57 }
  0xc7   :  { %v133_v58 = vsel %vm132_vm3, %v129_v56, %v131_v57 }
  0xc8   :  { %v134_v59 = vrot.slane %v133_v58, 4 }
  0xca   :  { %vm135_vm4 = vcmp.gt.s32.totalorder %v133_v58, %v134_v59 }
  0xcb   :  { %v136_v60 = vsel %vm135_vm4, %v133_v58, %v134_v59 }
  0xcc   :  { %v137_v61 = vrot.slane %v136_v60, 2 }
  0xce   :  { %vm138_vm5 = vcmp.gt.s32.totalorder %v136_v60, %v137_v61 }
  0xcf   :  { %v139_v62 = vsel %vm138_vm5, %v136_v60, %v137_v61  ;;  %vm120_vm5 = vcmp.eq.s32.totalorder %v927_v13, 0 }
  0xd0   :  { %v140_v63 = vrot.slane %v139_v62, 1 }
  0xd2   :  { %vm141_vm6 = vcmp.gt.s32.totalorder %v139_v62, %v140_v63 }
  0xd3   :  { %v142_v3 = vsel %vm141_vm6, %v139_v62, %v140_v63  ;;  %vm121_vm6 = vcmp.eq.s32.totalorder %v999_v29, %v115_v51 }
  0xd4   :  { %v143_v4 = vand.u32 31, %v142_v3 }
  0xd6   :  { %v144_v6 = vsub.s32 31, %v143_v4 }
  0xd8   :  { %vm145_vm7 = vcmp.eq.s32.totalorder %v927_v13, %v144_v6  ;;  %vm146_vm8 = vcmp.eq.s32.totalorder %v936_v20, %v144_v6  ;;  %vm147_vm9 = vcmp.eq.s32.totalorder %v930_v14, %v144_v6  ;;  %vm148_vm10 = vcmp.eq.s32.totalorder %v933_v19, %v144_v6 }
  0xd9   :  { %vm968_vm11 = vmor %vm116_vm12, %vm145_vm7 }
  0xda   :  { %vm974_vm1 = vmor %vm117_vm13, %vm146_vm8  ;;  %v157_v9 = vsel %vm968_vm11, 2147483648, %v95_v38  ;;  %vm153_vm8 = vcmp.eq.s32.totalorder %v927_v13, 1 }
  0xdb   :  { %vm982_vm2 = vmor %vm118_vm14, %vm147_vm9  ;;  %v158_v15 = vsel %vm974_vm1, 2147483648, %v96_v40  ;;  %vm154_vm9 = vcmp.eq.s32.totalorder %v999_v29, %v144_v6  ;;  %v1386_v40 = vmov 0 }
  0xdc   :  { %v1378_v11 = vsel %vm982_vm2, 4294967295, %v1377_v11  ;;  %vm990_vm12 = vmor %vm119_vm15, %vm148_vm10  ;;  %v159_v17 = vsel %vm982_vm2, 2147483648, %v97_v37  ;;  %vm161_vm13 = vcmp.gt.s32.totalorder %v157_v9, %v158_v15 }
  0xdd   :  { %v1380_v16 = vsel %vm990_vm12, 4294967295, %v1379_v16  ;;  %v160_v18 = vsel %vm990_vm12, 2147483648, %v98_v39  ;;  %v162_v21 = vsel %vm161_vm13, %v157_v9, %v158_v15  ;;  %vm122_vm10 = vmand %vm120_vm5, %vm121_vm6 }
  0xde   :  { %vm163_vm14 = vcmp.gt.s32.totalorder %v159_v17, %v160_v18  ;;  %vm155_vm13 = vmand %vm153_vm8, %vm154_vm9  ;;  %v123_v12 = vsel %vm122_vm10, 1.0, %v874_v10  ;;  %v1383_v10 = vmov 0  ;;  %vm1385_vm8 = vnez %v1380_v16 }
  0xdf   :  { %v164_v22 = vsel %vm163_vm14, %v159_v17, %v160_v18  ;;  %vm186_vm14 = vcmp.eq.s32.totalorder %v927_v13, 2  ;;  %v156_v37 = vsel %vm155_vm13, 1.0, %v123_v12  ;;  %vm1391_vm10 = vcmask 523264  }
  0xe0   :  { %vm165_vm3 = vcmp.gt.s32.totalorder %v162_v21, %v164_v22 }
  0xe1   :  { %v166_v25 = vsel %vm165_vm3, %v162_v21, %v164_v22  ;;  %vm190_vm3 = vcmask 261120  }
  0xe2   :  { %v167_v26 = vrot.slane %v166_v25, 4 }
  0xe4   :  { %vm168_vm4 = vcmp.gt.s32.totalorder %v166_v25, %v167_v26 }
  0xe5   :  { %v169_v27 = vsel %vm168_vm4, %v166_v25, %v167_v26 }
  0xe6   :  { %v170_v28 = vrot.slane %v169_v27, 2 }
  0xe8   :  { %vm171_vm15 = vcmp.gt.s32.totalorder %v169_v27, %v170_v28 }
  0xe9   :  { %v172_v30 = vsel %vm171_vm15, %v169_v27, %v170_v28 }
  0xea   :  { %v173_v33 = vrot.slane %v172_v30, 1 }
  0xec   :  { %vm174_vm7 = vcmp.gt.s32.totalorder %v172_v30, %v173_v33 }
  0xed   :  { %v175_v34 = vsel %vm174_vm7, %v172_v30, %v173_v33 }
  0xee   :  { %v176_v35 = vand.u32 31, %v175_v34 }
  0xf0   :  { %v177_v36 = vsub.s32 31, %v176_v35 }
  0xf2   :  { %vm187_vm4 = vcmp.eq.s32.totalorder %v999_v29, %v177_v36  ;;  %vm179_vm15 = vcmp.eq.s32.totalorder %v936_v20, %v177_v36  ;;  %vm178_vm0 = vcmp.eq.s32.totalorder %v927_v13, %v177_v36  ;;  %vm181_vm12 = vcmp.eq.s32.totalorder %v933_v19, %v177_v36 }
  0xf3   :  { %vm188_vm2 = vmand %vm186_vm14, %vm187_vm4  ;;  %vm180_vm6 = vcmp.eq.s32.totalorder %v930_v14, %v177_v36 }
  0xf4   :  { %v189_v38 = vsel %vm188_vm2, 1.0, %v156_v37  ;;  %vm1013_vm5 = vmor %vm974_vm1, %vm179_vm15  ;;  %vm1388_vm1 = vnez %v1378_v11 }
  0xf5   :  { %778 = vmatmul.mubr.msk.f32.vlgmr.msra.gmra.mrb[0].mxu0 %vm190_vm3, %v189_v38  ;;  %vm1020_vm7 = vmor %vm968_vm11, %vm178_vm0 }
  0xf6   :  { %v1384_v10 = vsel %vm1020_vm7, 4294967295, %v1383_v10  ;;  %vm1026_vm9 = vmor %vm1385_vm8, %vm181_vm12 }
  0xf7   :  { %v1387_v40 = vsel %vm1026_vm9, 4294967295, %v1386_v40  ;;  %vm1032_vm2 = vmor %vm1388_vm1, %vm180_vm6 }
  0xf8   :  { %v1390_v41 = vsel %vm1032_vm2, 4294967295, %v1389_v41  ;;  %vm1392_vm0 = vmmov %vm1391_vm10 }
  0xf9   :  { %v58_v50 = vsel %vm1392_vm0, %v52_v46, 0.0  ;;  %vm1393_vm11 = vmmov %vm1392_vm0 }
  0xfa   :  { %v55_v51 = vsel %vm1393_vm11, %v51_v47, 0.0  ;;  %vm1394_vm12 = vmmov %vm1392_vm0  ;;  %vm1369_vm11 = vcmask 64512  }
  0xfb   :  { %56 = vadd.xlane.f32.xlu1 %v55_v51  ;;  %v64_v52 = vsel %vm1394_vm12, %v54_v48, 0.0  ;;  %vm1395_vm13 = vmmov %vm1392_vm0 }
  0xfc   :  { %v61_v53 = vsel %vm1395_vm13, %v53_v49, 0.0  ;;  %vm1396_vm14 = vmmov %vm1392_vm0 }
  0xfd   :  { %vm1397_vm3 = vmmov %vm1392_vm0 }
  0xfe   :  { %vm1398_vm4 = vmmov %vm1392_vm0 }
  0xff   :  { %62 = vadd.xlane.f32.xlu1 %v61_v53  ;;  %vm1399_vm15 = vmmov %vm1392_vm0 }
 0x100   :  { %vm1400_vm6 = vmmov %vm1392_vm0 }
 0x188   :  { %v57_v58 = vpop.xlane.xlu1 %56 }
 0x189   :  { %v67_v60 = vmax.f32 %v57_v58, 1e-24 }
 0x18c   :  { %v63_v62 = vpop.xlane.xlu1 %62 }
 0x18d   :  { %v69_v3 = vmax.f32 %v63_v62, 1e-24 }
 0x1c8   :  { %v260_v42 = vpop.f32.mrb[0].mxu0 }
 0x1c9   :  { %v264_v43 = vmul.f32 %v260_v42, %v260_v42  ;;  %v779_v44 = vpop.f32.mrb[1].mxu0 }
 0x1cb   :  { %v265_v45 = vsel %vm1391_vm10, %v264_v43, 0.0 }
 0x1cc   :  { %266 = vadd.xlane.f32.xlu0 %v265_v45 }
 0x1d0   :  { %59 = vadd.xlane.f32.xlu0 %v58_v50 }
 0x1d4   :  { %65 = vadd.xlane.f32.xlu0 %v64_v52 }
 0x259   :  { %v267_v54 = vpop.xlane.xlu0 %266 }
 0x25a   :  { %v268_v1 = vmax.f32 %v267_v54, 1e-24 }
 0x25c   :  { %805 = vrsqrt.f32 %v268_v1 }
 0x25d   :  { %v60_v57 = vpop.xlane.xlu0 %59 }
 0x25e   :  { %v68_v59 = vmax.f32 %v60_v57, 1e-24 }
 0x260   :  { %807 = vrsqrt.f32 %v68_v59 }
 0x261   :  { %v66_v61 = vpop.xlane.xlu0 %65  ;;  %809 = vrsqrt.f32 %v67_v60 }
 0x262   :  { %v70_v63 = vmax.f32 %v66_v61, 1e-24 }
 0x264   :  { %811 = vrsqrt.f32 %v70_v63 }
 0x265   :  { %813 = vrsqrt.f32 %v69_v3 }
 0x266   :  { %v806_v55 = vpop.eup %805 }
 0x267   :  { %v270_v56 = vmul.f32 %v806_v55, %v260_v42 }
 0x269   :  { %780 = vmatprep.subr.msk.mxu1 %vm1396_vm14, %v270_v56 }
 0x26a   :  { %781 = vmatpush3.xpose.msk.msra.mxu1 %vm1397_vm3, %v270_v56  ;;  %v808_v4 = vpop.eup %807 }
 0x26d   :  { %783 = vmatmul.mubr.msk.f32.vlgmr.msra.gmra.mrb[0].mxu1 %vm1398_vm4, %v913_v5  ;;  %v810_v5 = vpop.eup %809 }
 0x26e   :  { %785 = vmatprep.mubr.msk.f32.mxu1 %vm1399_vm15, %v903_v0  ;;  %v812_v8 = vpop.eup %811 }
 0x271   :  { %786 = vmatmul.mubr.msk.f32.gmra.mrb[2].mxu1 %vm1400_vm6, %v907_v2  ;;  %v814_v2 = vpop.eup %813 }
 0x340   :  { %v784_v6 = vpop.f32.mrb[0].mxu1 }
 0x341   :  { %v372_v7 = vmul.f32 %v808_v4, %v784_v6  ;;  %v352_v0 = vpop.f32.mrb[1].mxu1 }
 0x342   :  { %v371_v9 = vmul.f32 %v810_v5, %v352_v0 }
 0x343   :  { %vm380_vm8 = vcmp.lt.s32.totalorder %v372_v7, 0  ;;  %v384_v11 = vxor.u32 2147483647, %v372_v7 }
 0x344   :  { %vm379_vm1 = vcmp.lt.s32.totalorder %v371_v9, 0  ;;  %v383_v15 = vxor.u32 2147483647, %v371_v9  ;;  %v787_v16 = vpop.f32.mrb[2].mxu1 }
 0x345   :  { %v388_v17 = vsel %vm380_vm8, %v384_v11, %v372_v7  ;;  %v374_v18 = vmul.f32 %v812_v8, %v787_v16  ;;  %v362_v21 = vpop.f32.mrb[3].mxu1 }
 0x346   :  { %v392_v22 = vand.u32 4294967264, %v388_v17  ;;  %v387_v25 = vsel %vm379_vm1, %v383_v15, %v371_v9  ;;  %v373_v26 = vmul.f32 %v814_v2, %v362_v21 }
 0x347   :  { %v391_v27 = vand.u32 4294967264, %v387_v25  ;;  %vm382_vm10 = vcmp.lt.s32.totalorder %v374_v18, 0  ;;  %v386_v28 = vxor.u32 2147483647, %v374_v18 }
 0x348   :  { %v396_v30 = vor.u32 %v392_v22, %v29_v32  ;;  %vm381_vm0 = vcmp.lt.s32.totalorder %v373_v26, 0  ;;  %v385_v33 = vxor.u32 2147483647, %v373_v26 }
 0x349   :  { %v395_v34 = vor.u32 %v391_v27, %v28_v24  ;;  %v390_v35 = vsel %vm382_vm10, %v386_v28, %v374_v18 }
 0x34a   :  { %v1063_v36 = vsel %vm1013_vm5, 2147483648, %v396_v30  ;;  %v394_v12 = vand.u32 4294967264, %v390_v35  ;;  %v389_v37 = vsel %vm381_vm0, %v385_v33, %v373_v26 }
 0x34b   :  { %v1067_v38 = vsel %vm1020_vm7, 2147483648, %v395_v34  ;;  %v393_v42 = vand.u32 4294967264, %v389_v37  ;;  %v413_v20 = vsel %vm1369_vm11, %v1063_v36, 2147483648 }
 0x34c   :  { %v412_v32 = vsel %vm1369_vm11, %v1067_v38, 2147483648  ;;  %v398_v13 = vor.u32 %v394_v12, %v31_v31 }
 0x34d   :  { %v397_v24 = vor.u32 %v393_v42, %v30_v23  ;;  %vm416_vm12 = vcmp.gt.s32.totalorder %v412_v32, %v413_v20 }
 0x34e   :  { %v1079_v43 = vsel %vm1026_vm9, 2147483648, %v398_v13  ;;  %v417_v19 = vsel %vm416_vm12, %v412_v32, %v413_v20 }
 0x34f   :  { %v415_v44 = vsel %vm1369_vm11, %v1079_v43, 2147483648  ;;  %v1085_v45 = vsel %vm1032_vm2, 2147483648, %v397_v24 }
 0x350   :  { %v414_v46 = vsel %vm1369_vm11, %v1085_v45, 2147483648 }
 0x351   :  { %vm418_vm13 = vcmp.gt.s32.totalorder %v414_v46, %v415_v44 }
 0x352   :  { %v419_v31 = vsel %vm418_vm13, %v414_v46, %v415_v44 }
 0x353   :  { %vm420_vm14 = vcmp.gt.s32.totalorder %v417_v19, %v419_v31 }
 0x354   :  { %v421_v14 = vsel %vm420_vm14, %v417_v19, %v419_v31 }
 0x355   :  { %v422_v23 = vrot.slane %v421_v14, 4 }
 0x357   :  { %vm423_vm3 = vcmp.gt.s32.totalorder %v421_v14, %v422_v23 }
 0x358   :  { %v424_v47 = vsel %vm423_vm3, %v421_v14, %v422_v23 }
 0x359   :  { %v425_v48 = vrot.slane %v424_v47, 2 }
 0x35b   :  { %vm426_vm4 = vcmp.gt.s32.totalorder %v424_v47, %v425_v48 }
 0x35c   :  { %v427_v49 = vsel %vm426_vm4, %v424_v47, %v425_v48 }
 0x35d   :  { %v428_v50 = vrot.slane %v427_v49, 1 }
 0x35f   :  { %vm429_vm15 = vcmp.gt.s32.totalorder %v427_v49, %v428_v50 }
 0x360   :  { %v430_v51 = vsel %vm429_vm15, %v427_v49, %v428_v50 }
 0x361   :  { %vm431_vm6 = vcmp.eq.s32.totalorder %v1067_v38, %v430_v51  ;;  %vm1368_vm8 = vcmp.eq.s32.totalorder %v1063_v36, %v430_v51  ;;  %vm1367_vm1 = vcmp.eq.s32.totalorder %v1085_v45, %v430_v51  ;;  %vm1366_vm10 = vcmp.eq.s32.totalorder %v1079_v43, %v430_v51 }
 0x362   :  { %v435_v52 = vsel %vm431_vm6, 2147483648, %v1067_v38  ;;  %v436_v53 = vsel %vm1368_vm8, 2147483648, %v1063_v36  ;;  %v437_v54 = vsel %vm1367_vm1, 2147483648, %v1085_v45  ;;  %v438_v1 = vsel %vm1366_vm10, 2147483648, %v1079_v43 }
 0x363   :  { %v439_v55 = vsel %vm1369_vm11, %v435_v52, 2147483648  ;;  %v440_v56 = vsel %vm1369_vm11, %v436_v53, 2147483648  ;;  %v441_v57 = vsel %vm1369_vm11, %v437_v54, 2147483648  ;;  %v442_v58 = vsel %vm1369_vm11, %v438_v1, 2147483648 }
 0x364   :  { %vm443_vm0 = vcmp.gt.s32.totalorder %v439_v55, %v440_v56  ;;  %vm445_vm12 = vcmp.gt.s32.totalorder %v441_v57, %v442_v58 }
 0x365   :  { %v444_v59 = vsel %vm443_vm0, %v439_v55, %v440_v56  ;;  %v446_v60 = vsel %vm445_vm12, %v441_v57, %v442_v58  ;;  %vm1403_vm0 = vcmp.eq.s32.totalorder %v1063_v36, %v430_v51 }
 0x366   :  { %vm447_vm13 = vcmp.gt.s32.totalorder %v444_v59, %v446_v60 }
 0x367   :  { %v448_v61 = vsel %vm447_vm13, %v444_v59, %v446_v60  ;;  %vm1406_vm13 = vcmp.eq.s32.totalorder %v1085_v45, %v430_v51 }
 0x368   :  { %v449_v62 = vrot.slane %v448_v61, 4 }
 0x36a   :  { %vm450_vm14 = vcmp.gt.s32.totalorder %v448_v61, %v449_v62 }
 0x36b   :  { %v451_v63 = vsel %vm450_vm14, %v448_v61, %v449_v62 }
 0x36c   :  { %v452_v3 = vrot.slane %v451_v63, 2 }
 0x36e   :  { %vm453_vm3 = vcmp.gt.s32.totalorder %v451_v63, %v452_v3 }
 0x36f   :  { %v454_v4 = vsel %vm453_vm3, %v451_v63, %v452_v3 }
 0x370   :  { %v455_v5 = vrot.slane %v454_v4, 1 }
 0x372   :  { %vm456_vm4 = vcmp.gt.s32.totalorder %v454_v4, %v455_v5 }
 0x373   :  { %v457_v6 = vsel %vm456_vm4, %v454_v4, %v455_v5 }
 0x374   :  { %vm458_vm15 = vcmp.eq.s32.totalorder %v435_v52, %v457_v6  ;;  %vm459_vm10 = vcmp.eq.s32.totalorder %v436_v53, %v457_v6  ;;  %vm460_vm1 = vcmp.eq.s32.totalorder %v437_v54, %v457_v6  ;;  %vm461_vm8 = vcmp.eq.s32.totalorder %v438_v1, %v457_v6 }
 0x375   :  { %vm1111_vm11 = vmor %vm431_vm6, %vm458_vm15  ;;  %vm1409_vm6 = vcmask 64512  }
 0x376   :  { %vm1117_vm12 = vmor %vm1403_vm0, %vm459_vm10  ;;  %v466_v8 = vsel %vm1111_vm11, 2147483648, %v1067_v38  ;;  %vm1410_vm10 = vcmp.eq.s32.totalorder %v1079_v43, %v430_v51 }
 0x377   :  { %vm1126_vm14 = vmor %vm1406_vm13, %vm460_vm1  ;;  %v467_v2 = vsel %vm1117_vm12, 2147483648, %v1063_v36  ;;  %v470_v11 = vsel %vm1409_vm6, %v466_v8, 2147483648 }
 0x378   :  { %vm1136_vm3 = vmor %vm1410_vm10, %vm461_vm8  ;;  %v468_v16 = vsel %vm1126_vm14, 2147483648, %v1085_v45 }
 0x379   :  { %vm1413_vm1 = vmmov %vm1409_vm6  ;;  %v469_v18 = vsel %vm1136_vm3, 2147483648, %v1079_v43 }
 0x37a   :  { %v471_v17 = vsel %vm1413_vm1, %v467_v2, 2147483648  ;;  %vm1414_vm4 = vmmov %vm1413_vm1 }
 0x37b   :  { %v472_v21 = vsel %vm1414_vm4, %v468_v16, 2147483648  ;;  %vm474_vm15 = vcmp.gt.s32.totalorder %v470_v11, %v471_v17  ;;  %vm1415_vm0 = vmmov %vm1413_vm1 }
 0x37c   :  { %v473_v22 = vsel %vm1415_vm0, %v469_v18, 2147483648  ;;  %v475_v25 = vsel %vm474_vm15, %v470_v11, %v471_v17 }
 0x37d   :  { %vm476_vm8 = vcmp.gt.s32.totalorder %v472_v21, %v473_v22 }
 0x37e   :  { %v477_v26 = vsel %vm476_vm8, %v472_v21, %v473_v22 }
 0x37f   :  { %vm478_vm13 = vcmp.gt.s32.totalorder %v475_v25, %v477_v26 }
 0x380   :  { %v479_v27 = vsel %vm478_vm13, %v475_v25, %v477_v26 }
 0x381   :  { %v480_v28 = vrot.slane %v479_v27, 4 }
 0x383   :  { %vm481_vm6 = vcmp.gt.s32.totalorder %v479_v27, %v480_v28 }
 0x384   :  { %v482_v30 = vsel %vm481_vm6, %v479_v27, %v480_v28 }
 0x385   :  { %v483_v33 = vrot.slane %v482_v30, 2 }
 0x387   :  { %vm484_vm10 = vcmp.gt.s32.totalorder %v482_v30, %v483_v33 }
 0x388   :  { %v485_v34 = vsel %vm484_vm10, %v482_v30, %v483_v33 }
 0x389   :  { %v486_v35 = vrot.slane %v485_v34, 1 }
 0x38b   :  { %vm487_vm1 = vcmp.gt.s32.totalorder %v485_v34, %v486_v35 }
 0x38c   :  { %v488_v12 = vsel %vm487_vm1, %v485_v34, %v486_v35 }
 0x38d   :  { %vm489_vm2 = vcmp.eq.s32.totalorder %v466_v8, %v488_v12  ;;  %vm490_vm9 = vcmp.eq.s32.totalorder %v467_v2, %v488_v12  ;;  %vm491_vm4 = vcmp.eq.s32.totalorder %v468_v16, %v488_v12  ;;  %vm492_vm7 = vcmp.eq.s32.totalorder %v469_v18, %v488_v12 }
 0x38e   :  { %vm1151_vm15 = vmor %vm1111_vm11, %vm489_vm2  ;;  %vm1422_vm2 = vcmask 64512  }
 0x38f   :  { %vm1157_vm0 = vmor %vm1117_vm12, %vm490_vm9  ;;  %v497_v20 = vsel %vm1151_vm15, 2147483648, %v1067_v38 }
 0x390   :  { %vm1166_vm8 = vmor %vm1126_vm14, %vm491_vm4  ;;  %v498_v13 = vsel %vm1157_vm0, 2147483648, %v1063_v36  ;;  %v501_v24 = vsel %vm1422_vm2, %v497_v20, 2147483648 }
 0x391   :  { %vm1176_vm9 = vmor %vm1136_vm3, %vm492_vm7  ;;  %v499_v46 = vsel %vm1166_vm8, 2147483648, %v1085_v45 }
 0x392   :  { %vm1425_vm11 = vmmov %vm1422_vm2  ;;  %v500_v31 = vsel %vm1176_vm9, 2147483648, %v1079_v43 }
 0x393   :  { %v502_v19 = vsel %vm1425_vm11, %v498_v13, 2147483648  ;;  %vm1426_vm12 = vmmov %vm1422_vm2 }
 0x394   :  { %v503_v14 = vsel %vm1426_vm12, %v499_v46, 2147483648  ;;  %vm505_vm14 = vcmp.gt.s32.totalorder %v501_v24, %v502_v19  ;;  %vm1427_vm13 = vmmov %vm1422_vm2 }
 0x395   :  { %v504_v23 = vsel %vm1427_vm13, %v500_v31, 2147483648  ;;  %v506_v47 = vsel %vm505_vm14, %v501_v24, %v502_v19 }
 0x396   :  { %vm507_vm7 = vcmp.gt.s32.totalorder %v503_v14, %v504_v23 }
 0x397   :  { %v508_v48 = vsel %vm507_vm7, %v503_v14, %v504_v23 }
 0x398   :  { %vm509_vm3 = vcmp.gt.s32.totalorder %v506_v47, %v508_v48 }
 0x399   :  { %v510_v49 = vsel %vm509_vm3, %v506_v47, %v508_v48 }
 0x39a   :  { %v511_v50 = vrot.slane %v510_v49, 4 }
 0x39c   :  { %vm512_vm6 = vcmp.gt.s32.totalorder %v510_v49, %v511_v50 }
 0x39d   :  { %v513_v51 = vsel %vm512_vm6, %v510_v49, %v511_v50 }
 0x39e   :  { %v514_v52 = vrot.slane %v513_v51, 2 }
 0x3a0   :  { %vm515_vm10 = vcmp.gt.s32.totalorder %v513_v51, %v514_v52 }
 0x3a1   :  { %v516_v53 = vsel %vm515_vm10, %v513_v51, %v514_v52 }
 0x3a2   :  { %v517_v54 = vrot.slane %v516_v53, 1 }
 0x3a4   :  { %vm518_vm1 = vcmp.gt.s32.totalorder %v516_v53, %v517_v54 }
 0x3a5   :  { %v519_v1 = vsel %vm518_vm1, %v516_v53, %v517_v54 }
 0x3a6   :  { %vm520_vm4 = vcmp.eq.s32.totalorder %v497_v20, %v519_v1  ;;  %vm521_vm2 = vcmp.eq.s32.totalorder %v498_v13, %v519_v1  ;;  %vm522_vm11 = vcmp.eq.s32.totalorder %v499_v46, %v519_v1  ;;  %vm523_vm12 = vcmp.eq.s32.totalorder %v500_v31, %v519_v1 }
 0x3a7   :  { %vm1191_vm14 = vmor %vm1151_vm15, %vm520_vm4  ;;  %vm1434_vm15 = vcmask 64512  }
 0x3a8   :  { %vm1197_vm13 = vmor %vm1157_vm0, %vm521_vm2  ;;  %v528_v57 = vsel %vm1191_vm14, 2147483648, %v1067_v38 }
 0x3a9   :  { %vm1206_vm7 = vmor %vm1166_vm8, %vm522_vm11  ;;  %v529_v59 = vsel %vm1197_vm13, 2147483648, %v1063_v36  ;;  %v532_v60 = vsel %vm1434_vm15, %v528_v57, 2147483648 }
 0x3aa   :  { %vm1216_vm0 = vmor %vm1176_vm9, %vm523_vm12  ;;  %v530_v62 = vsel %vm1206_vm7, 2147483648, %v1085_v45 }
 0x3ab   :  { %vm1437_vm8 = vmmov %vm1434_vm15  ;;  %v531_v3 = vsel %vm1216_vm0, 2147483648, %v1079_v43 }
 0x3ac   :  { %v533_v63 = vsel %vm1437_vm8, %v529_v59, 2147483648  ;;  %vm1438_vm3 = vmmov %vm1437_vm8 }
 0x3ad   :  { %v534_v4 = vsel %vm1438_vm3, %v530_v62, 2147483648  ;;  %vm536_vm6 = vcmp.gt.s32.totalorder %v532_v60, %v533_v63  ;;  %vm1439_vm10 = vmmov %vm1438_vm3 }
 0x3ae   :  { %v535_v5 = vsel %vm1439_vm10, %v531_v3, 2147483648  ;;  %v537_v6 = vsel %vm536_vm6, %v532_v60, %v533_v63 }
 0x3af   :  { %vm538_vm9 = vcmp.gt.s32.totalorder %v534_v4, %v535_v5 }
 0x3b0   :  { %v539_v7 = vsel %vm538_vm9, %v534_v4, %v535_v5 }
 0x3b1   :  { %vm540_vm1 = vcmp.gt.s32.totalorder %v537_v6, %v539_v7 }
 0x3b2   :  { %v541_v0 = vsel %vm540_vm1, %v537_v6, %v539_v7 }
 0x3b3   :  { %v542_v8 = vrot.slane %v541_v0, 4 }
 0x3b5   :  { %vm543_vm4 = vcmp.gt.s32.totalorder %v541_v0, %v542_v8 }
 0x3b6   :  { %v544_v9 = vsel %vm543_vm4, %v541_v0, %v542_v8 }
 0x3b7   :  { %v545_v2 = vrot.slane %v544_v9, 2 }
 0x3b9   :  { %vm546_vm2 = vcmp.gt.s32.totalorder %v544_v9, %v545_v2 }
 0x3ba   :  { %v547_v11 = vsel %vm546_vm2, %v544_v9, %v545_v2 }
 0x3bb   :  { %v548_v15 = vrot.slane %v547_v11, 1 }
 0x3bd   :  { %vm549_vm11 = vcmp.gt.s32.totalorder %v547_v11, %v548_v15 }
 0x3be   :  { %v550_v16 = vsel %vm549_vm11, %v547_v11, %v548_v15 }
 0x3bf   :  { %vm551_vm12 = vcmp.eq.s32.totalorder %v528_v57, %v550_v16  ;;  %vm552_vm15 = vcmp.eq.s32.totalorder %v529_v59, %v550_v16  ;;  %vm553_vm8 = vcmp.eq.s32.totalorder %v530_v62, %v550_v16  ;;  %vm554_vm3 = vcmp.eq.s32.totalorder %v531_v3, %v550_v16 }
 0x3c0   :  { %vm1231_vm6 = vmor %vm1191_vm14, %vm551_vm12  ;;  %vm1446_vm14 = vcmask 64512  }
 0x3c1   :  { %vm1237_vm10 = vmor %vm1197_vm13, %vm552_vm15  ;;  %v559_v21 = vsel %vm1231_vm6, 2147483648, %v1067_v38 }
 0x3c2   :  { %vm1246_vm9 = vmor %vm1206_vm7, %vm553_vm8  ;;  %v560_v25 = vsel %vm1237_vm10, 2147483648, %v1063_v36  ;;  %v563_v26 = vsel %vm1446_vm14, %v559_v21, 2147483648 }
 0x3c3   :  { %vm1256_vm13 = vmor %vm1216_vm0, %vm554_vm3  ;;  %v561_v28 = vsel %vm1246_vm9, 2147483648, %v1085_v45 }
 0x3c4   :  { %vm1449_vm7 = vmmov %vm1446_vm14  ;;  %v562_v33 = vsel %vm1256_vm13, 2147483648, %v1079_v43 }
 0x3c5   :  { %v564_v30 = vsel %vm1449_vm7, %v560_v25, 2147483648  ;;  %vm1450_vm1 = vmmov %vm1449_vm7 }
 0x3c6   :  { %v565_v34 = vsel %vm1450_vm1, %v561_v28, 2147483648  ;;  %vm567_vm4 = vcmp.gt.s32.totalorder %v563_v26, %v564_v30  ;;  %vm1451_vm2 = vmmov %vm1450_vm1 }
 0x3c7   :  { %v566_v35 = vsel %vm1451_vm2, %v562_v33, 2147483648  ;;  %v568_v12 = vsel %vm567_vm4, %v563_v26, %v564_v30 }
 0x3c8   :  { %vm569_vm0 = vcmp.gt.s32.totalorder %v565_v34, %v566_v35 }
 0x3c9   :  { %v570_v37 = vsel %vm569_vm0, %v565_v34, %v566_v35 }
 0x3ca   :  { %vm571_vm11 = vcmp.gt.s32.totalorder %v568_v12, %v570_v37 }
 0x3cb   :  { %v572_v42 = vsel %vm571_vm11, %v568_v12, %v570_v37 }
 0x3cc   :  { %v573_v20 = vrot.slane %v572_v42, 4 }
 0x3ce   :  { %vm574_vm12 = vcmp.gt.s32.totalorder %v572_v42, %v573_v20 }
 0x3cf   :  { %v575_v32 = vsel %vm574_vm12, %v572_v42, %v573_v20 }
 0x3d0   :  { %v576_v13 = vrot.slane %v575_v32, 2 }
 0x3d2   :  { %vm577_vm15 = vcmp.gt.s32.totalorder %v575_v32, %v576_v13 }
 0x3d3   :  { %v578_v24 = vsel %vm577_vm15, %v575_v32, %v576_v13 }
 0x3d4   :  { %v579_v44 = vrot.slane %v578_v24, 1 }
 0x3d6   :  { %vm580_vm8 = vcmp.gt.s32.totalorder %v578_v24, %v579_v44 }
 0x3d7   :  { %v581_v46 = vsel %vm580_vm8, %v578_v24, %v579_v44 }
 0x3d8   :  { %vm582_vm3 = vcmp.eq.s32.totalorder %v559_v21, %v581_v46  ;;  %vm583_vm14 = vcmp.eq.s32.totalorder %v560_v25, %v581_v46  ;;  %vm584_vm7 = vcmp.eq.s32.totalorder %v561_v28, %v581_v46  ;;  %vm585_vm1 = vcmp.eq.s32.totalorder %v562_v33, %v581_v46 }
 0x3d9   :  { %vm1271_vm4 = vmor %vm1231_vm6, %vm582_vm3  ;;  %vm1458_vm6 = vcmask 64512  }
 0x3da   :  { %vm1277_vm2 = vmor %vm1237_vm10, %vm583_vm14  ;;  %v590_v14 = vsel %vm1271_vm4, 2147483648, %v1067_v38 }
 0x3db   :  { %vm1286_vm0 = vmor %vm1246_vm9, %vm584_vm7  ;;  %v591_v47 = vsel %vm1277_vm2, 2147483648, %v1063_v36  ;;  %v594_v48 = vsel %vm1458_vm6, %v590_v14, 2147483648 }
 0x3dc   :  { %vm1296_vm10 = vmor %vm1256_vm13, %vm585_vm1  ;;  %v592_v38 = vsel %vm1286_vm0, 2147483648, %v1085_v45  ;;  %vm621_vm1 = vcmp.lt.s32.totalorder %v999_v29, 3 }
 0x3dd   :  { %vm1461_vm9 = vmmov %vm1458_vm6  ;;  %v593_v51 = vsel %vm1296_vm10, 2147483648, %v1079_v43  ;;  %v875_v43 = vmov 0  }
 0x3de   :  { %v595_v50 = vsel %vm1461_vm9, %v591_v47, 2147483648  ;;  %vm1462_vm11 = vmmov %vm1458_vm6 }
 0x3df   :  { %v596_v36 = vsel %vm1462_vm11, %v592_v38, 2147483648  ;;  %vm598_vm12 = vcmp.gt.s32.totalorder %v594_v48, %v595_v50  ;;  %vm1463_vm15 = vmmov %vm1458_vm6 }
 0x3e0   :  { %v597_v52 = vsel %vm1463_vm15, %v593_v51, 2147483648  ;;  %v599_v53 = vsel %vm598_vm12, %v594_v48, %v595_v50 }
 0x3e1   :  { %vm600_vm13 = vcmp.gt.s32.totalorder %v596_v36, %v597_v52 }
 0x3e2   :  { %v601_v54 = vsel %vm600_vm13, %v596_v36, %v597_v52  ;;  %v876_v52 = vmov 1.0  }
 0x3e3   :  { %vm602_vm8 = vcmp.gt.s32.totalorder %v599_v53, %v601_v54 }
 0x3e4   :  { %v603_v1 = vsel %vm602_vm8, %v599_v53, %v601_v54  ;;  %vm1464_vm8 = vcmask 64512  }
 0x3e5   :  { %v604_v55 = vrot.slane %v603_v1, 4 }
 0x3e7   :  { %vm605_vm3 = vcmp.gt.s32.totalorder %v603_v1, %v604_v55 }
 0x3e8   :  { %v606_v56 = vsel %vm605_vm3, %v603_v1, %v604_v55 }
 0x3e9   :  { %v607_v45 = vrot.slane %v606_v56, 2 }
 0x3eb   :  { %vm608_vm14 = vcmp.gt.s32.totalorder %v606_v56, %v607_v45 }
 0x3ec   :  { %v609_v57 = vsel %vm608_vm14, %v606_v56, %v607_v45 }
 0x3ed   :  { %v610_v58 = vrot.slane %v609_v57, 1 }
 0x3ef   :  { %vm611_vm7 = vcmp.gt.s32.totalorder %v609_v57, %v610_v58 }
 0x3f0   :  { %v612_v59 = vsel %vm611_vm7, %v609_v57, %v610_v58  ;;  %vm1465_vm7 = vmmov %vm1464_vm8 }
 0x3f1   :  { %vm614_vm6 = vcmp.eq.s32.totalorder %v591_v47, %v612_v59  ;;  %vm613_vm9 = vcmp.eq.s32.totalorder %v590_v14, %v612_v59  ;;  %vm616_vm15 = vcmp.eq.s32.totalorder %v593_v51, %v612_v59  ;;  %vm615_vm14 = vcmp.eq.s32.totalorder %v592_v38, %v612_v59 }
 0x3f2   :  { %vm618_vm11 = vmor %vm1277_vm2, %vm614_vm6 }
 0x3f3   :  { %vm625_vm12 = vmand %vm618_vm11, %vm621_vm1 }
 0x3f4   :  { %v629_v60 = vsel %vm625_vm12, 1, %v875_v43  ;;  %vm617_vm13 = vmor %vm1271_vm4, %vm613_vm9 }
 0x3f5   :  { %v647_v61 = vsel %vm1464_vm8, %v629_v60, 2147483648  ;;  %vm624_vm3 = vmand %vm617_vm13, %vm621_vm1  ;;  %vm704_vm8 = vcmask 7168  }
 0x3f6   :  { %v649_v62 = vshra.s32 %v647_v61, 16  ;;  %v628_v63 = vsel %vm624_vm3, 1, %v875_v43  ;;  %vm620_vm2 = vmor %vm1296_vm10, %vm616_vm15  ;;  %v648_v17 = vand.u32 65535, %v647_v61 }
 0x3f7   :  { %v632_v3 = vsel %vm1465_vm7, %v628_v63, 2147483648  ;;  %vm627_vm6 = vmand %vm620_vm2, %vm621_vm1  ;;  %vm1468_vm2 = vnez %v1384_v10 }
 0x3f8   :  { %v651_v4 = vcvt.s32.f32 %v649_v62  ;;  %v634_v5 = vshra.s32 %v632_v3, 16  ;;  %v631_v6 = vsel %vm627_vm6, 1, %v875_v43  ;;  %vm619_vm4 = vmor %vm1286_vm0, %vm615_vm14  ;;  %v633_v18 = vand.u32 65535, %v632_v3 }
 0x3f9   :  { %vm1466_vm9 = vmmov %vm1465_vm7  ;;  %v650_v22 = vcvt.s32.f32 %v648_v17  ;;  %v818_v17 = vld [vmem:[#allocation2 + $0x8] sm:$0xff] }
 0x3fa   :  { %v677_v7 = vsel %vm1466_vm9, %v631_v6, 2147483648  ;;  %vm626_vm11 = vmand %vm619_vm4, %vm621_vm1  ;;  %652 = vmax.xlane.f32.xlu0 %v651_v4  ;;  %v636_v0 = vcvt.s32.f32 %v634_v5  ;;  %v635_v27 = vcvt.s32.f32 %v633_v18  ;;  %vm1469_vm4 = vnez %v1387_v40 }
 0x3fb   :  { %v679_v8 = vshra.s32 %v677_v7, 16  ;;  %v630_v9 = vsel %vm626_vm11, 1, %v875_v43  ;;  %vm1467_vm10 = vmmov %vm1465_vm7  ;;  %v678_v25 = vand.u32 65535, %v677_v7  ;;  %vm1470_vm11 = vnez %v1390_v41 }
 0x3fc   :  { %v662_v2 = vsel %vm1467_vm10, %v630_v9, 2147483648  ;;  %637 = vmax.xlane.f32.xlu1 %v636_v0 }
 0x3fd   :  { %v681_v11 = vcvt.s32.f32 %v679_v8  ;;  %v664_v15 = vshra.s32 %v662_v2, 16  ;;  %v663_v28 = vand.u32 65535, %v662_v2  ;;  %v680_v34 = vcvt.s32.f32 %v678_v25  ;;  %v820_v25 = vld [vmem:[#allocation2 + $0x18] sm:$0xff] }
 0x3ff   :  { %682 = vmax.xlane.f32.xlu0 %v681_v11  ;;  %v666_v16 = vcvt.s32.f32 %v664_v15  ;;  %v665_v37 = vcvt.s32.f32 %v663_v28  ;;  %v817_v15 = vld [vmem:[#allocation2] sm:$0xff] }
 0x401   :  { %667 = vmax.xlane.f32.xlu1 %v666_v16 }
 0x487   :  { %v653_v21 = vpop.xlane.xlu0 %652 }
 0x488   :  { %vm654_vm0 = vcmp.eq.f32.partialorder %v651_v4, %v653_v21  ;;  %v659_v20 = vcvt.f32.s32 %v653_v21  ;;  %v819_v21 = vld [vmem:[#allocation2 + $0x10] sm:$0xff] }
 0x489   :  { %v638_v29 = vpop.xlane.xlu1 %637  ;;  %v655_v26 = vsel %vm654_vm0, %v650_v22, -inf  ;;  %vm1471_vm0 = vcmask 523264  }
 0x48a   :  { %656 = vmax.xlane.f32.xlu0 %v655_v26  ;;  %vm639_vm1 = vcmp.eq.f32.partialorder %v636_v0, %v638_v29  ;;  %v644_v32 = vcvt.f32.s32 %v638_v29  ;;  %v660_v24 = vshll.u32 %v659_v20, 16 }
 0x48b   :  { %v640_v30 = vsel %vm639_vm1, %v635_v27, -inf  ;;  %vm1472_vm1 = vmmov %vm1471_vm0 }
 0x48c   :  { %v683_v33 = vpop.xlane.xlu0 %682  ;;  %641 = vmax.xlane.f32.xlu1 %v640_v30  ;;  %v645_v14 = vshll.u32 %v644_v32, 16 }
 0x48d   :  { %vm684_vm12 = vcmp.eq.f32.partialorder %v681_v11, %v683_v33  ;;  %v689_v44 = vcvt.f32.s32 %v683_v33 }
 0x48e   :  { %v668_v35 = vpop.xlane.xlu1 %667  ;;  %v685_v12 = vsel %vm684_vm12, %v680_v34, -inf  ;;  %vm1473_vm12 = vmmov %vm1471_vm0 }
 0x48f   :  { %686 = vmax.xlane.f32.xlu0 %v685_v12  ;;  %vm669_vm15 = vcmp.eq.f32.partialorder %v666_v16, %v668_v35  ;;  %v674_v19 = vcvt.f32.s32 %v668_v35  ;;  %v690_v49 = vshll.u32 %v689_v44, 16 }
 0x490   :  { %v670_v42 = vsel %vm669_vm15, %v665_v37, -inf  ;;  %vm1474_vm15 = vmmov %vm1471_vm0 }
 0x491   :  { %671 = vmax.xlane.f32.xlu1 %v670_v42  ;;  %v675_v51 = vshll.u32 %v674_v19, 16 }
 0x517   :  { %v657_v13 = vpop.xlane.xlu0 %656 }
 0x518   :  { %v658_v46 = vcvt.f32.s32 %v657_v13 }
 0x519   :  { %v642_v31 = vpop.xlane.xlu1 %641 }
 0x51a   :  { %v661_v23 = vadd.s32 %v660_v24, %v658_v46  ;;  %v643_v47 = vcvt.f32.s32 %v642_v31 }
 0x51c   :  { %v687_v48 = vpop.xlane.xlu0 %686  ;;  %vm693_vm13 = vcmp.gt.s32.totalorder %v661_v23, 0  ;;  %v646_v38 = vadd.s32 %v645_v14, %v643_v47 }
 0x51d   :  { %v688_v50 = vcvt.f32.s32 %v687_v48  ;;  %vm697_vm3 = vmor %vm1013_vm5, %vm693_vm13 }
 0x51e   :  { %v672_v36 = vpop.xlane.xlu1 %671  ;;  %v701_v53 = vsel %vm697_vm3, 0.0, %v876_v52  ;;  %vm692_vm14 = vcmp.gt.s32.totalorder %v646_v38, 0 }
 0x51f   :  { %v691_v54 = vadd.s32 %v690_v49, %v688_v50  ;;  %v673_v1 = vcvt.f32.s32 %v672_v36  ;;  %vm696_vm7 = vmor %vm1468_vm2, %vm692_vm14  ;;  %v706_v45 = vsel %vm704_vm8, %v701_v53, 0.0 }
 0x520   :  { %v700_v55 = vsel %vm696_vm7, 0.0, %v876_v52 }
 0x521   :  { %vm695_vm6 = vcmp.gt.s32.totalorder %v691_v54, 0  ;;  %v676_v56 = vadd.s32 %v675_v51, %v673_v1  ;;  %v705_v57 = vsel %vm704_vm8, %v700_v55, 0.0 }
 0x522   :  { %vm699_vm9 = vmor %vm1469_vm4, %vm695_vm6  ;;  %v707_v59 = vadd.f32 %v706_v45, %v705_v57 }
 0x523   :  { %vm694_vm5 = vcmp.gt.s32.totalorder %v676_v56, 0  ;;  %v703_v58 = vsel %vm699_vm9, 0.0, %v876_v52 }
 0x524   :  { %vm698_vm10 = vmor %vm1470_vm11, %vm694_vm5  ;;  %v710_v60 = vsel %vm704_vm8, %v703_v58, 0.0 }
 0x525   :  { %v702_v39 = vsel %vm698_vm10, 0.0, %v876_v52 }
 0x526   :  { %v708_v10 = vsel %vm704_vm8, %v702_v39, 0.0 }
 0x527   :  { %v709_v43 = vadd.f32 %v708_v10, %v707_v59 }
 0x529   :  { %v711_v61 = vadd.f32 %v710_v60, %v709_v43 }
 0x52b   :  { %712 = vadd.xlane.f32.xlu1 %v711_v61 }
 0x5b8   :  { %v713_v62 = vpop.xlane.xlu1 %712 }
 0x5b9   :  { %v714_v63 = vrot.slane %v713_v62, 4 }
 0x5bb   :  { %v715_v3 = vadd.f32 %v714_v63, %v713_v62 }
 0x5bd   :  { %v716_v4 = vrot.slane %v715_v3, 2 }
 0x5bf   :  { %v717_v40 = vadd.f32 %v716_v4, %v715_v3 }
 0x5c1   :  { %v718_v5 = vrot.slane %v717_v40, 1 }
 0x5c3   :  { %v719_v6 = vadd.f32 %v718_v5, %v717_v40 }
 0x5c5   :  { %794 = vpush %v719_v6 }
 0x5f6   :  { %s795_s0 = spop %794 }
 0x5f7   :  { %v721_v41 = vstv %s795_s0 }
 0x5f8   :  { %815 = vrcp.f32 %v721_v41 }
 0x602   :  { %v816_v7 = vpop.eup %815 }
 0x603   :  { %v723_v0 = vmul.f32 32.0, %v816_v7 }
 0x605   :  { %v724_v8 = vmul.f32 %v723_v0, %v700_v55  ;;  %v725_v9 = vmul.f32 %v723_v0, %v701_v53  ;;  %v726_v2 = vmul.f32 %v723_v0, %v702_v39  ;;  %v727_v11 = vmul.f32 %v723_v0, %v703_v58 }
 0x607   :  { %v728_v16 = vmul.f32 %v817_v15, %v724_v8  ;;  %v729_v18 = vmul.f32 %v818_v17, %v725_v9  ;;  %v730_v22 = vmul.f32 %v819_v21, %v726_v2  ;;  %v731_v29 = vmul.f32 %v820_v25, %v727_v11 }
 0x609   :  { %732 = vst.msk [vmem:[#allocation5] sm:$0xff] %vm1471_vm0, %v728_v16 }
 0x60a   :  { %733 = vst.msk [vmem:[#allocation5 + $0x8] sm:$0xff] %vm1472_vm1, %v729_v18 }
 0x60b   :  { %734 = vst.msk [vmem:[#allocation5 + $0x10] sm:$0xff] %vm1473_vm12, %v730_v22 }
 0x60c   :  { %735 = vst.msk [vmem:[#allocation5 + $0x18] sm:$0xff] %vm1474_vm15, %v731_v29 }
 0x60d   :  { %854 = shalt.err (!%p851_p12)
}
 0x60e   :  { %s855_s25 = scalar_lea.hbm %s1362_s1, 512 }
 0x60f   :  { %p856_p13 = scmp.ne.s32.totalorder %s1362_s1, %s855_s25  ;;  %p859_p0 = scmp.lt.u32.totalorder %s855_s25, %s1362_s1 }
 0x611   :  { %p861_p1 = pnand %p859_p0, %p856_p13 }
 0x613   :  { %864 = shalt.err (!%p861_p1)
}
 0x614   :  { %747 = dma.vmem_to_hbm [thread:$0]  %s742_s21, 512, %s1362_s1, [#allocation4], %s870_s16, %s870_s16, %s871_s17  }
 0x615   :  { %867 = dma.done.wait [#allocation4], 512  }
 0x616   :  { %868 = vsyncadd [#allocation4], 4294966784 }
 0x617   :  { %751 = vsyncpa [#allocation3], 1 }
 0x618   :  { %752 = vsyncpa [#allocation4], 1 }

</bundles_post_ra>
